<compile_context>
chip_gen: v7x
topology: tpu7x:2x2x1
jax: 0.10.0
libtpu: 0.0.40
codegen_flags: <defaults>
</compile_context>

<pallas_src>
import jax
import jax.numpy as jnp
from jax.experimental import pallas as pl
from jax.experimental.pallas import tpu as pltpu

_EXP_HALF = 1.6487212707001282  # exp(0.5)


def vib_kernel(x_ref, w_ref, b_ref, eps_ref, out_ref):
    L = eps_ref.shape[-1]
    TB = out_ref.shape[0]
    OW = out_ref.shape[-1]

    # One fused matmul for [mu | log_var]: bf16 operands, f32 accumulation on the MXU.
    acc = jnp.dot(x_ref[...], w_ref[...],
                  preferred_element_type=jnp.float32) + b_ref[...]      # (TB, 2L) f32

    mu = acc[:, :L]
    log_var = acc[:, L:]

    # Single EUP exp, reused: exp(0.5 + log_var) == exp(0.5) * exp(log_var).
    e = jnp.exp(log_var)
    z = mu + (_EXP_HALF * e) * eps_ref[...]

    # kl = -0.5 + sum(1 + lv - mu^2 - exp(lv), dim=1)
    #    = (L - 0.5) + sum(lv - mu^2 - exp(lv), dim=1)   (constant "+1" folded)
    kl = (L - 0.5) + jnp.sum(log_var - mu * mu - e, axis=1, keepdims=True)   # (TB, 1)

    # Lane-dense combined output: lanes [0:L) = z, lanes [L:OW) = kl (broadcast).
    # Built in vregs, then one unmasked full-width store of the block.
    out_ref[...] = jnp.concatenate(
        [z, jnp.broadcast_to(kl, (TB, OW - L))], axis=1)


def vib_forward(x, w_mu, b_mu, w_lv, b_lv, eps, *, block_b=1024):
    """x:(B,1000) f32, w_*:(1000,L), b_*:(L,), eps:(B,L). Returns (z:(B,L), kl:(B,))."""
    B, K = x.shape
    L = w_mu.shape[1]
    # Output lane width: z lanes + >=1 kl lane, rounded up to a full 128-lane vreg width.
    ow = pl.cdiv(L + 1, 128) * 128

    # Fuse the two linear layers; bf16 weights/activations halve HBM bytes.
    w_cat = jnp.concatenate([w_mu, w_lv], axis=1).astype(jnp.bfloat16)      # (K, 2L)
    b_cat = jnp.concatenate([b_mu, b_lv]).reshape(1, 2 * L).astype(jnp.float32)
    x_bf = x.astype(jnp.bfloat16)
    eps = eps.astype(jnp.float32)

    # Batch tiling: weights stay VMEM-resident across the grid; x/eps/out are streamed.
    tb = min(block_b, -(-B // 8) * 8)          # sublane-aligned tile
    nb = pl.cdiv(B, tb)
    b_pad = nb * tb
    if b_pad != B:
        x_bf = jnp.pad(x_bf, ((0, b_pad - B), (0, 0)))
        eps = jnp.pad(eps, ((0, b_pad - B), (0, 0)))

    cost = pl.CostEstimate(
        flops=2 * b_pad * K * (2 * L),
        transcendentals=b_pad * L,
        bytes_accessed=(x_bf.size * 2 + w_cat.size * 2 + b_cat.size * 4
                        + eps.size * 4 + b_pad * ow * 4),
    )

    out = pl.pallas_call(
        vib_kernel,
        out_shape=jax.ShapeDtypeStruct((b_pad, ow), jnp.float32),
        grid=(nb,),
        in_specs=[
            pl.BlockSpec((tb, K), lambda i: (i, 0)),        # x tile (streamed)
            pl.BlockSpec((K, 2 * L), lambda i: (0, 0)),     # fused W  (VMEM-resident)
            pl.BlockSpec((1, 2 * L), lambda i: (0, 0)),     # fused b  (VMEM-resident)
            pl.BlockSpec((tb, L), lambda i: (i, 0)),        # eps tile (streamed)
        ],
        out_specs=pl.BlockSpec((tb, ow), lambda i: (i, 0)),
        compiler_params=pltpu.CompilerParams(
            dimension_semantics=("parallel",)),
        cost_estimate=cost,
    )(x_bf, w_cat, b_cat, eps)

    z = out[:B, :L]
    kl = out[:B, L]          # kl was broadcast across lanes [L:ow); take one column
    return z, kl


def init_params(key, in_features=1000, latent_dim=32):
    # nn.Linear default init: U(-1/sqrt(fan_in), 1/sqrt(fan_in)); weights stored (in, out).
    k_wm, k_bm, k_wv, k_bv = jax.random.split(key, 4)
    bound = 1.0 / (in_features ** 0.5)
    w_mu = jax.random.uniform(k_wm, (in_features, latent_dim), jnp.float32, -bound, bound)
    b_mu = jax.random.uniform(k_bm, (latent_dim,), jnp.float32, -bound, bound)
    w_lv = jax.random.uniform(k_wv, (in_features, latent_dim), jnp.float32, -bound, bound)
    b_lv = jax.random.uniform(k_bv, (latent_dim,), jnp.float32, -bound, bound)
    return w_mu, b_mu, w_lv, b_lv


if __name__ == "__main__":
    B = 8          # batch
    IN = 1000      # fixed by the module: nn.Linear(1000, latent_dim)
    LATENT = 32

    key = jax.random.PRNGKey(0)
    k_x, k_p, k_eps = jax.random.split(key, 3)

    x = jax.random.normal(k_x, (B, IN), jnp.float32)
    w_mu, b_mu, w_lv, b_lv = init_params(k_p, IN, LATENT)
    # TODO(synk): torch.randn_like(std) has no bitwise JAX equivalent; eps is drawn here.
    eps = jax.random.normal(k_eps, (B, LATENT), jnp.float32)

    z, kl = vib_forward(x, w_mu, b_mu, w_lv, b_lv, eps)
    jax.block_until_ready((z, kl))

    # --- Tight check against a reference matched to the kernel's mixed precision
    #     (bf16 operands, f32 accumulation). ---
    xq = x.astype(jnp.bfloat16)
    mu_ref = jnp.dot(xq, w_mu.astype(jnp.bfloat16),
                     preferred_element_type=jnp.float32) + b_mu
    lv_ref = jnp.dot(xq, w_lv.astype(jnp.bfloat16),
                     preferred_element_type=jnp.float32) + b_lv
    z_ref = mu_ref + jnp.exp(0.5 + lv_ref) * eps
    kl_ref = -0.5 + jnp.sum(1.0 + lv_ref - mu_ref ** 2 - jnp.exp(lv_ref), axis=1)
    assert jnp.allclose(z, z_ref, rtol=1e-4, atol=1e-4), "z mismatch (bf16-matched ref)"
    assert jnp.allclose(kl, kl_ref, rtol=1e-3, atol=1e-3), "kl mismatch (bf16-matched ref)"

    # --- Loose sanity check against the full-f32 module semantics
    #     (difference is bf16 quantization noise only). ---
    mu32 = x @ w_mu + b_mu
    lv32 = x @ w_lv + b_lv
    z32 = mu32 + jnp.exp(0.5 + lv32) * eps
    kl32 = -0.5 + jnp.sum(1.0 + lv32 - mu32 ** 2 - jnp.exp(lv32), axis=1)
    assert jnp.allclose(z, z32, rtol=5e-2, atol=1e-1), "z drifted from f32 semantics"
    assert jnp.allclose(kl, kl32, rtol=1e-1, atol=2.0), "kl drifted from f32 semantics"

    print("KERNEL_OK")
</pallas_src>

<mosaic_0001>
module attributes {stable_mosaic.version = 11 : i64} {
  func.func @vib_kernel(%arg0: i32, %arg1: memref<8x1000xbf16, #tpu.memory_space<vmem>>, %arg2: memref<1000x64xbf16, #tpu.memory_space<vmem>>, %arg3: memref<1x64xf32, #tpu.memory_space<vmem>>, %arg4: memref<8x32xf32, #tpu.memory_space<vmem>>, %arg5: memref<8x128xf32, #tpu.memory_space<vmem>>) attributes {dimension_semantics = [#tpu.dimension_semantics<parallel>], iteration_bounds = array<i64: 1>, scalar_prefetch = 0 : i64, scratch_operands = 0 : i64, tpu.core_type = #tpu.core_type<tc>, window_params = [{transform_indices = @transform_0, window_bounds = array<i64: 8, 1000>}, {pipeline_mode = #tpu.pipeline_mode<synchronous>, transform_indices = @transform_1, window_bounds = array<i64: 1000, 64>}, {pipeline_mode = #tpu.pipeline_mode<synchronous>, transform_indices = @transform_2, window_bounds = array<i64: 1, 64>}, {transform_indices = @transform_3, window_bounds = array<i64: 8, 32>}, {transform_indices = @transform_4, window_bounds = array<i64: 8, 128>}]} {
    %c0 = arith.constant 0 : index
    %c0_0 = arith.constant 0 : index
    %0 = vector.load %arg1[%c0, %c0_0] : memref<8x1000xbf16, #tpu.memory_space<vmem>>, vector<8x1000xbf16>
    %c0_1 = arith.constant 0 : index
    %c0_2 = arith.constant 0 : index
    %1 = vector.load %arg2[%c0_1, %c0_2] : memref<1000x64xbf16, #tpu.memory_space<vmem>>, vector<1000x64xbf16>
    %cst = arith.constant dense<0.000000e+00> : vector<8x64xf32>
    %2 = tpu.matmul %0, %1, %cst {dimension_numbers = #tpu.dot_dimension_numbers<[1], [0], [0], [1], [0, 0, 1, 1], [], []>} : vector<8x1000xbf16>, vector<1000x64xbf16>, vector<8x64xf32> -> vector<8x64xf32>
    %c0_3 = arith.constant 0 : index
    %c0_4 = arith.constant 0 : index
    %3 = vector.load %arg3[%c0_3, %c0_4] : memref<1x64xf32, #tpu.memory_space<vmem>>, vector<1x64xf32>
    %4 = vector.broadcast %3 : vector<1x64xf32> to vector<8x64xf32>
    %5 = arith.addf %2, %4 : vector<8x64xf32>
    %6 = vector.extract_strided_slice %5 {offsets = [0, 0], sizes = [8, 32], strides = [1, 1]} : vector<8x64xf32> to vector<8x32xf32>
    %7 = vector.extract_strided_slice %5 {offsets = [0, 32], sizes = [8, 32], strides = [1, 1]} : vector<8x64xf32> to vector<8x32xf32>
    %8 = math.exp %7 : vector<8x32xf32>
    %cst_5 = arith.constant 1.64872122 : f32
    %9 = vector.broadcast %cst_5 : f32 to vector<8x32xf32>
    %10 = arith.mulf %9, %8 : vector<8x32xf32>
    %c0_6 = arith.constant 0 : index
    %c0_7 = arith.constant 0 : index
    %11 = vector.load %arg4[%c0_6, %c0_7] : memref<8x32xf32, #tpu.memory_space<vmem>>, vector<8x32xf32>
    %12 = arith.mulf %10, %11 : vector<8x32xf32>
    %13 = arith.addf %6, %12 : vector<8x32xf32>
    %14 = arith.mulf %6, %6 : vector<8x32xf32>
    %15 = arith.subf %7, %14 : vector<8x32xf32>
    %16 = arith.subf %15, %8 : vector<8x32xf32>
    %cst_8 = arith.constant dense<0.000000e+00> : vector<8xf32>
    %17 = vector.multi_reduction <add>, %16, %cst_8 [1] : vector<8x32xf32> to vector<8xf32>
    %18 = vector.shape_cast %17 : vector<8xf32> to vector<8x1xf32>
    %cst_9 = arith.constant 3.150000e+01 : f32
    %19 = vector.broadcast %cst_9 : f32 to vector<8x1xf32>
    %20 = arith.addf %19, %18 : vector<8x1xf32>
    %21 = vector.shape_cast %20 : vector<8x1xf32> to vector<8x1xf32>
    %22 = vector.broadcast %21 : vector<8x1xf32> to vector<8x96xf32>
    %23 = tpu.concatenate %13, %22 in 1 : vector<8x32xf32>, vector<8x96xf32> -> vector<8x128xf32>
    %c0_10 = arith.constant 0 : index
    %c0_11 = arith.constant 0 : index
    %24 = vector.load %arg5[%c0_10, %c0_11] : memref<8x128xf32, #tpu.memory_space<vmem>>, vector<8x128xf32>
    tpu.vector_store %arg5[%c0_10, %c0_11], %23 {strides = array<i32>} : memref<8x128xf32, #tpu.memory_space<vmem>>, vector<8x128xf32>,
    return
  }
  func.func @transform_0(%arg0: i32) -> (i32, i32) {
    %c0_i32 = arith.constant 0 : i32
    %c0_i32_0 = arith.constant 0 : i32
    return %arg0, %c0_i32 : i32, i32
  }
  func.func @transform_1(%arg0: i32) -> (i32, i32) {
    %c0_i32 = arith.constant 0 : i32
    %c0_i32_0 = arith.constant 0 : i32
    %c0_i32_1 = arith.constant 0 : i32
    return %c0_i32, %c0_i32_0 : i32, i32
  }
  func.func @transform_2(%arg0: i32) -> (i32, i32) {
    %c0_i32 = arith.constant 0 : i32
    %c0_i32_0 = arith.constant 0 : i32
    %c0_i32_1 = arith.constant 0 : i32
    return %c0_i32, %c0_i32_0 : i32, i32
  }
  func.func @transform_3(%arg0: i32) -> (i32, i32) {
    %c0_i32 = arith.constant 0 : i32
    %c0_i32_0 = arith.constant 0 : i32
    return %arg0, %c0_i32 : i32, i32
  }
  func.func @transform_4(%arg0: i32) -> (i32, i32) {
    %c0_i32 = arith.constant 0 : i32
    %c0_i32_0 = arith.constant 0 : i32
    return %arg0, %c0_i32 : i32, i32
  }
}

</mosaic_0001>

<bundles_post_ra>
// kernel: tpu_custom_call.1
= control target key start
LH: loop header
LB: loop body
LE: loop exit
PB: predicated region body
PF: predicated region fallthrough
CT: control target
= control target key end

     0   :  { %v1011_v39 = vmov 0   ;;  %vm557_vm0 = vcmask 850944   ;;  %s1276_s0 = inlined_call_operand.vmem [shape: bf16[8,1000], index: 0, kind: input, shape index: {}]   ;;  %s1277_s1 = inlined_call_operand.vmem [shape: bf16[1000,64], index: 1, kind: input, shape index: {}]   ;;  %s1278_s2 = inlined_call_operand.vmem [shape: f32[1,64], index: 2, kind: input, shape index: {}]   ;;  %s1279_s3 = inlined_call_operand.vmem [shape: f32[8,32], index: 3, kind: input, shape index: {}]   ;;  %s1280_s4 = inlined_call_operand.hbm [shape: f32[8,128], index: 4, kind: output, shape index: {}]  }
   0x1   :  { %v914_v0 = vld [vmem:[%s1277_s1 + $0x40] sm:$0xff]   ;;  %v918_v4 = vld [vmem:[%s1277_s1 + $0x48] sm:$0xff]   ;;  %v922_v8 = vld [vmem:[%s1277_s1 + $0x50] sm:$0xff]  }
   0x2   :  { %v915_v1 = vld [vmem:[%s1277_s1 + $0xc0] sm:$0xff]   ;;  %844 = vmatprep.subr.bf16.mxu0 %v914_v0  ;;  %v919_v5 = vld [vmem:[%s1277_s1 + $0xc8] sm:$0xff]   ;;  %v923_v9 = vld [vmem:[%s1277_s1 + $0xd0] sm:$0xff]  }
   0x3   :  { %v916_v2 = vld [vmem:[%s1277_s1] sm:$0xff]   ;;  %866 = vmatprep.subr.bf16.mxu1 %v915_v1  ;;  %v920_v6 = vld [vmem:[%s1277_s1 + $0x8] sm:$0xff]   ;;  %v924_v10 = vld [vmem:[%s1277_s1 + $0x10] sm:$0xff]  }
   0x4   :  { %v917_v3 = vld [vmem:[%s1277_s1 + $0x80] sm:$0xff]   ;;  %845 = vmatpush3.bf16.msra.mxu0 %v916_v2  ;;  %v921_v7 = vld [vmem:[%s1277_s1 + $0x88] sm:$0xff]   ;;  %v925_v11 = vld [vmem:[%s1277_s1 + $0x90] sm:$0xff]  }
   0x5   :  { %867 = vmatpush3.bf16.msra.mxu1 %v917_v3  ;;  %846 = vmatprep.subr.bf16.mxu0 %v918_v4  ;;  %v926_v12 = vld [vmem:[%s1277_s1 + $0x58] sm:$0xff]   ;;  %v930_v16 = vld [vmem:[%s1277_s1 + $0x60] sm:$0xff]   ;;  %v934_v20 = vld [vmem:[%s1277_s1 + $0x68] sm:$0xff]  }
   0x6   :  { %868 = vmatprep.subr.bf16.mxu1 %v919_v5  ;;  %v927_v13 = vld [vmem:[%s1277_s1 + $0xd8] sm:$0xff]   ;;  %v931_v17 = vld [vmem:[%s1277_s1 + $0xe0] sm:$0xff]   ;;  %v935_v21 = vld [vmem:[%s1277_s1 + $0xe8] sm:$0xff]  }
   0x7   :  { %v928_v14 = vld [vmem:[%s1277_s1 + $0x18] sm:$0xff]   ;;  %v932_v18 = vld [vmem:[%s1277_s1 + $0x20] sm:$0xff]   ;;  %v936_v22 = vld [vmem:[%s1277_s1 + $0x28] sm:$0xff]  }
   0x8   :  { %847 = vmatpush3.bf16.msra.mxu0 %v920_v6  ;;  %v929_v15 = vld [vmem:[%s1277_s1 + $0x98] sm:$0xff]   ;;  %v933_v19 = vld [vmem:[%s1277_s1 + $0xa0] sm:$0xff]   ;;  %v937_v23 = vld [vmem:[%s1277_s1 + $0xa8] sm:$0xff]  }
   0x9   :  { %869 = vmatpush3.bf16.msra.mxu1 %v921_v7  ;;  %848 = vmatprep.subr.bf16.mxu0 %v922_v8  ;;  %v938_v24 = vld [vmem:[%s1277_s1 + $0x70] sm:$0xff]   ;;  %v942_v28 = vld [vmem:[%s1277_s1 + $0x78] sm:$0xff]   ;;  %v19_v32 = vld [vmem:[%s1276_s0] sm:$0xff] }
   0xa   :  { %870 = vmatprep.subr.bf16.mxu1 %v923_v9  ;;  %v939_v25 = vld [vmem:[%s1277_s1 + $0xf0] sm:$0xff]   ;;  %v943_v29 = vld [vmem:[%s1277_s1 + $0xf8] sm:$0xff]   ;;  %v20_v33 = vld [vmem:[%s1276_s0 + $0x8] sm:$0xff]  ;;  %v772_v34 = vcombine.low %v19_v32, %v19_v32  ;;  %v773_v35 = vcombine.high %v19_v32, %v19_v32 }
   0xb   :  { %v940_v26 = vld [vmem:[%s1277_s1 + $0x30] sm:$0xff]   ;;  %v944_v30 = vld [vmem:[%s1277_s1 + $0x38] sm:$0xff]   ;;  %v774_v36 = vcombine.low %v20_v33, %v20_v33  ;;  %v775_v37 = vcombine.high %v20_v33, %v20_v33  ;;  %v950_v38 = vld [vmem:[%s1277_s1 + $0x140] sm:$0xff]  }
   0xc   :  { %849 = vmatpush3.bf16.msra.mxu0 %v924_v10  ;;  %v941_v27 = vld [vmem:[%s1277_s1 + $0xb0] sm:$0xff]   ;;  %v945_v31 = vld [vmem:[%s1277_s1 + $0xb8] sm:$0xff]   ;;  %v951_v40 = vld [vmem:[%s1277_s1 + $0x100] sm:$0xff]   ;;  %597 = vmatprep.mubr.bf16.mxu0 %v773_v35 }
   0xd   :  { %871 = vmatpush3.bf16.msra.mxu1 %v925_v11  ;;  %850 = vmatprep.subr.bf16.mxu0 %v926_v12  ;;  %v952_v41 = vld [vmem:[%s1277_s1 + $0x180] sm:$0xff]   ;;  %v953_v42 = vld [vmem:[%s1277_s1 + $0x148] sm:$0xff]   ;;  %v956_v45 = vld [vmem:[%s1277_s1 + $0x150] sm:$0xff]  }
   0xe   :  { %872 = vmatprep.subr.bf16.mxu1 %v927_v13  ;;  %637 = vmatprep.mubr.bf16.mxu1 %v775_v37  ;;  %v954_v43 = vld [vmem:[%s1277_s1 + $0x108] sm:$0xff]   ;;  %v958_v46 = vld [vmem:[%s1277_s1 + $0x190] sm:$0xff]   ;;  %v959_v48 = vld [vmem:[%s1277_s1 + $0x158] sm:$0xff]  }
   0xf   :  { %v955_v44 = vld [vmem:[%s1277_s1 + $0x188] sm:$0xff]   ;;  %v957_v47 = vld [vmem:[%s1277_s1 + $0x110] sm:$0xff]   ;;  %v961_v49 = vld [vmem:[%s1277_s1 + $0x198] sm:$0xff]  }
  0x10   :  { %851 = vmatpush3.bf16.msra.mxu0 %v928_v14  ;;  %v960_v50 = vld [vmem:[%s1277_s1 + $0x118] sm:$0xff]   ;;  %v962_v51 = vld [vmem:[%s1277_s1 + $0x160] sm:$0xff]   ;;  %v965_v54 = vld [vmem:[%s1277_s1 + $0x168] sm:$0xff]  }
  0x11   :  { %873 = vmatpush3.bf16.msra.mxu1 %v929_v15  ;;  %852 = vmatprep.subr.bf16.mxu0 %v930_v16  ;;  %v964_v52 = vld [vmem:[%s1277_s1 + $0x1a0] sm:$0xff]   ;;  %v967_v55 = vld [vmem:[%s1277_s1 + $0x1a8] sm:$0xff]   ;;  %v968_v57 = vld [vmem:[%s1277_s1 + $0x170] sm:$0xff]  }
  0x12   :  { %874 = vmatprep.subr.bf16.mxu1 %v931_v17  ;;  %v963_v53 = vld [vmem:[%s1277_s1 + $0x120] sm:$0xff]   ;;  %v966_v56 = vld [vmem:[%s1277_s1 + $0x128] sm:$0xff]   ;;  %v21_v58 = vld [vmem:[%s1276_s0 + $0x10] sm:$0xff] }
  0x13   :  { %v970_v59 = vld [vmem:[%s1277_s1 + $0x1b0] sm:$0xff]   ;;  %v777_v60 = vcombine.high %v21_v58, %v21_v58  ;;  %v971_v62 = vld [vmem:[%s1277_s1 + $0x178] sm:$0xff]   ;;  %v728_v3 = vld [vmem:[%s1279_s3] sm:$0xff] }
  0x14   :  { %853 = vmatpush3.bf16.msra.mxu0 %v932_v18  ;;  %v969_v61 = vld [vmem:[%s1277_s1 + $0x130] sm:$0xff]   ;;  %v973_v63 = vld [vmem:[%s1277_s1 + $0x1b8] sm:$0xff]  }
  0x15   :  { %875 = vmatpush3.bf16.msra.mxu1 %v933_v19  ;;  %854 = vmatprep.subr.bf16.mxu0 %v934_v20  ;;  %v972_v0 = vld [vmem:[%s1277_s1 + $0x138] sm:$0xff]  }
  0x16   :  { %876 = vmatprep.subr.bf16.mxu1 %v935_v21  ;;  %v22_v1 = vld [vmem:[%s1276_s0 + $0x18] sm:$0xff] }
  0x17   :  { %v779_v2 = vcombine.high %v22_v1, %v22_v1 }
  0x18   :  { %855 = vmatpush3.bf16.msra.mxu0 %v936_v22 }
  0x19   :  { %877 = vmatpush3.bf16.msra.mxu1 %v937_v23  ;;  %856 = vmatprep.subr.bf16.mxu0 %v938_v24 }
  0x1a   :  { %878 = vmatprep.subr.bf16.mxu1 %v939_v25 }
  0x1c   :  { %857 = vmatpush3.bf16.msra.mxu0 %v940_v26 }
  0x1d   :  { %879 = vmatpush3.bf16.msra.mxu1 %v941_v27  ;;  %858 = vmatprep.subr.bf16.mxu0 %v942_v28 }
  0x1e   :  { %880 = vmatprep.subr.bf16.mxu1 %v943_v29 }
  0x20   :  { %859 = vmatpush3.bf16.msra.mxu0 %v944_v30 }
  0x21   :  { %881 = vmatpush3.bf16.msra.mxu1 %v945_v31  ;;  %888 = vmatprep.subr.bf16.mxu0 %v950_v38 }
  0x22   :  { %685 = vmatprep.subr.bf16.mxu1 %v1011_v39 }
  0x23   :  { %598 = vmatmul.mubr.bf16.vlgmr.msra.gmra.mrb[0].mxu0 %v772_v34 }
  0x24   :  { %638 = vmatmul.mubr.bf16.vlgmr.msra.gmra.mrb[0].mxu1 %v774_v36  ;;  %889 = vmatpush3.bf16.msra.mxu0 %v951_v40 }
  0x25   :  { %686 = vmatpush1.bf16.msra.mxu1 %v952_v41  ;;  %890 = vmatprep.subr.bf16.mxu0 %v953_v42 }
  0x26   :  { %687 = vmatprep.subr.bf16.mxu1 %v1011_v39  ;;  %677 = vmatprep.mubr.bf16.mxu0 %v777_v60 }
  0x28   :  { %891 = vmatpush3.bf16.msra.mxu0 %v954_v43 }
  0x29   :  { %688 = vmatpush1.bf16.msra.mxu1 %v955_v44  ;;  %892 = vmatprep.subr.bf16.mxu0 %v956_v45 }
  0x2a   :  { %689 = vmatprep.subr.bf16.mxu1 %v1011_v39 }
  0x2c   :  { %893 = vmatpush3.bf16.msra.mxu0 %v957_v47 }
  0x2d   :  { %690 = vmatpush1.bf16.msra.mxu1 %v958_v46  ;;  %894 = vmatprep.subr.bf16.mxu0 %v959_v48 }
  0x2e   :  { %691 = vmatprep.subr.bf16.mxu1 %v1011_v39 }
  0x30   :  { %895 = vmatpush3.bf16.msra.mxu0 %v960_v50 }
  0x31   :  { %692 = vmatpush1.bf16.msra.mxu1 %v961_v49  ;;  %896 = vmatprep.subr.bf16.mxu0 %v962_v51 }
  0x32   :  { %693 = vmatprep.subr.bf16.mxu1 %v1011_v39 }
  0x34   :  { %897 = vmatpush3.bf16.msra.mxu0 %v963_v53 }
  0x35   :  { %694 = vmatpush1.bf16.msra.mxu1 %v964_v52  ;;  %898 = vmatprep.subr.bf16.mxu0 %v965_v54 }
  0x36   :  { %695 = vmatprep.subr.bf16.mxu1 %v1011_v39 }
  0x38   :  { %899 = vmatpush3.bf16.msra.mxu0 %v966_v56 }
  0x39   :  { %696 = vmatpush1.bf16.msra.mxu1 %v967_v55  ;;  %900 = vmatprep.subr.bf16.mxu0 %v968_v57 }
  0x3a   :  { %697 = vmatprep.subr.bf16.mxu1 %v1011_v39 }
  0x3c   :  { %901 = vmatpush3.bf16.msra.mxu0 %v969_v61 }
  0x3d   :  { %698 = vmatpush1.bf16.msra.mxu1 %v970_v59  ;;  %902 = vmatprep.subr.bf16.mxu0 %v971_v62 }
  0x3e   :  { %699 = vmatprep.subr.bf16.mxu1 %v1011_v39 }
  0x3f   :  { %9 = vsyncpa [#allocation3], 0  ;;  %v776_v4 = vcombine.low %v21_v58, %v21_v58  ;;  %v976_v5 = vld [vmem:[%s1277_s1 + $0x1c0] sm:$0xff]   ;;  %s1012_s9 = smov 32   ;;  %843 = vmatprep.mubr.msk.bf16.mxu1 %vm557_vm0, %v779_v2  ;;  %v977_v6 = vld [vmem:[%s1277_s1 + $0x1c8] sm:$0xff]   ;;  %vm561_vm1 = vcmask 1043456   ;;  %v778_v13 = vcombine.low %v22_v1, %v22_v1 }
  0x40   :  { %730 = vrot.lane.b32.xlu1 %v728_v3, %s1012_s9  ;;  %903 = vmatpush3.bf16.msra.mxu0 %v972_v0  ;;  %v978_v7 = vld [vmem:[%s1277_s1 + $0x1d0] sm:$0xff]   ;;  %v979_v8 = vld [vmem:[%s1277_s1 + $0x1d8] sm:$0xff]   ;;  %v980_v9 = vld [vmem:[%s1277_s1 + $0x1e0] sm:$0xff]   ;;  %vm750_vm2 = vcmask 261120  }
  0x41   :  { %700 = vmatpush1.bf16.msra.mxu1 %v973_v63  ;;  %v981_v10 = vld [vmem:[%s1277_s1 + $0x1e8] sm:$0xff]   ;;  %v982_v11 = vld [vmem:[%s1277_s1 + $0x1f0] ss:$0 sps:$4 sm:$0xff]   ;;  %v771_v16 = vld [vmem:[%s1278_s2] ss:$0 sm:$0xff]  ;;  %s1013_s1 = smov 96  }
  0x42   :  { %701 = vmatprep.subr.bf16.mxu1 %v1011_v39  ;;  %v563_v12 = vsel %vm561_vm1, %v982_v11, 0  ;;  %s1014_s2 = smov [#allocation2]  }
  0x43   :  { %678 = vmatmul.mubr.bf16.vlgmr.msra.gmra.mrb[4].mxu0 %v776_v4  ;;  %s763_s22 = sshll.u32 %s1014_s2, 4  ;;  %s764_s22 = int_to_ptr.vmem [resolvable:$true] %s763_s22 }
  0x44   :  { %s987_s23 = scalar_lea.vmem %s764_s22, 128  ;;  %p992_p1 = scmp.lt.s32.totalorder %s764_s22, %s764_s22 }
  0x45   :  { %702 = vmatpush1.bf16.msra.mxu1 %v976_v5  ;;  %p988_p0 = scmp.ne.s32.totalorder %s764_s22, %s987_s23  ;;  %p993_p2 = scmp.lt.s32.totalorder %s987_s23, %s987_s23 }
  0x46   :  { %703 = vmatprep.subr.bf16.mxu1 %v1011_v39 }
  0x47   :  { %p994_p3 = por %p993_p2, %p992_p1 }
  0x49   :  { %704 = vmatpush1.bf16.msra.mxu1 %v977_v6  ;;  %p995_p4 = pnand %p994_p3, %p988_p0 }
  0x4a   :  { %705 = vmatprep.subr.bf16.mxu1 %v1011_v39 }
  0x4d   :  { %706 = vmatpush1.bf16.msra.mxu1 %v978_v7 }
  0x4e   :  { %707 = vmatprep.subr.bf16.mxu1 %v1011_v39 }
  0x51   :  { %708 = vmatpush1.bf16.msra.mxu1 %v979_v8 }
  0x52   :  { %709 = vmatprep.subr.bf16.mxu1 %v1011_v39 }
  0x55   :  { %710 = vmatpush1.bf16.msra.mxu1 %v980_v9 }
  0x56   :  { %711 = vmatprep.subr.bf16.mxu1 %v1011_v39 }
  0x59   :  { %712 = vmatpush1.bf16.msra.mxu1 %v981_v10 }
  0x5a   :  { %713 = vmatprep.subr.bf16.mxu1 %v1011_v39 }
  0x5d   :  { %714 = vmatpush1.bf16.msra.mxu1 %v563_v12 }
  0x60   :  { %718 = vmatmul.mubr.bf16.vlgmr.msra.gmra.mrb[4].mxu1 %v778_v13 }
  0xb2   :  { %v731_v45 = vpop.permute.xlu1 %730 }
  0xf6   :  { %v860_v14 = vpop.f32.mrb[0].mxu0 }
  0xf7   :  { %v882_v15 = vpop.f32.mrb[0].mxu1  ;;  %v861_v17 = vpop.f32.mrb[1].mxu0 }
  0xf8   :  { %v883_v18 = vpop.f32.mrb[1].mxu1  ;;  %v862_v19 = vadd.f32 %v861_v17, %v860_v14  ;;  %v863_v22 = vpop.f32.mrb[2].mxu0 }
  0xf9   :  { %v884_v20 = vadd.f32 %v883_v18, %v882_v15  ;;  %v885_v21 = vpop.f32.mrb[2].mxu1  ;;  %v864_v24 = vpop.f32.mrb[3].mxu0 }
  0xfa   :  { %v886_v23 = vpop.f32.mrb[3].mxu1  ;;  %v600_v25 = vadd.f32 %v862_v19, %v771_v16 }
  0xfc   :  { %v640_v26 = vadd.f32 %v884_v20, %v600_v25 }
 0x116   :  { %v904_v27 = vpop.f32.mrb[4].mxu0 }
 0x117   :  { %v905_v28 = vpop.f32.mrb[5].mxu0 }
 0x118   :  { %v906_v29 = vadd.f32 %v905_v28, %v904_v27  ;;  %v907_v30 = vpop.f32.mrb[6].mxu0 }
 0x119   :  { %v908_v31 = vpop.f32.mrb[7].mxu0 }
 0x11a   :  { %v680_v32 = vadd.f32 %v906_v29, %v640_v26 }
 0x133   :  { %v719_v33 = vpop.f32.mrb[4].mxu1 }
 0x134   :  { %v720_v34 = vadd.f32 %v719_v33, %v680_v32  ;;  %v721_v35 = vpop.f32.mrb[5].mxu1 }
 0x135   :  { %v722_v36 = vpop.f32.mrb[6].mxu1 }
 0x136   :  { %v723_v37 = vpop.f32.mrb[7].mxu1  ;;  %v739_v38 = vmul.f32 %v720_v34, %v720_v34  ;;  %v725_v39 = vmul.f32 1.442695, %v720_v34 }
 0x138   :  { %741 = vrot.lane.b32.xlu0 %v739_v38, %s1012_s9  ;;  %985 = vpow2.f32 %v725_v39 }
 0x142   :  { %v986_v40 = vpop.eup %985 }
 0x143   :  { %v727_v43 = vmul.f32 1.6487212, %v986_v40 }
 0x145   :  { %v733_v46 = vmul.f32 %v731_v45, %v727_v43 }
 0x1aa   :  { %v742_v41 = vpop.permute.xlu0 %741 }
 0x1ab   :  { %v744_v42 = vsub.f32 %v720_v34, %v742_v41 }
 0x1ad   :  { %v745_v44 = vsub.f32 %v744_v42, %v986_v40 }
 0x1af   :  { %747 = vrot.lane.b32.xlu0 %v745_v44, %s1013_s1 }
 0x1b3   :  { %735 = vrot.lane.b32.xlu0 %v733_v46, %s1013_s1 }
 0x221   :  { %v748_v47 = vpop.permute.xlu0 %747 }
 0x222   :  { %v751_v48 = vsel %vm750_vm2, %v748_v47, 0.0 }
 0x223   :  { %752 = vadd.xlane.f32.xlu1 %v751_v48 }
 0x225   :  { %v736_v49 = vpop.permute.xlu0 %735 }
 0x226   :  { %v738_v51 = vadd.f32 %v736_v49, %v720_v34 }
 0x2b0   :  { %v753_v50 = vpop.xlane.xlu1 %752 }
 0x2b1   :  { %v754_v52 = vadd.f32 31.5, %v753_v50 }
 0x2b3   :  { %v755_v53 = vsel %vm750_vm2, %v738_v51, %v754_v52 }
 0x2b4   :  { %756 = vst [vmem:[#allocation2] sm:$0xff] %v755_v53 }
 0x2b5   :  { %998 = shalt.err (!%p995_p4)
}
 0x2b6   :  { %s999_s26 = scalar_lea.hbm %s1280_s4, 128 }
 0x2b7   :  { %p1000_p5 = scmp.ne.s32.totalorder %s1280_s4, %s999_s26  ;;  %p1003_p6 = scmp.lt.u32.totalorder %s999_s26, %s1280_s4 }
 0x2b9   :  { %p1005_p7 = pnand %p1003_p6, %p1000_p5 }
 0x2bb   :  { %1008 = shalt.err (!%p1005_p7)
}
 0x2bc   :  { %766 = dma.vmem_to_hbm [thread:$0]  %s764_s22, 128, %s1280_s4, [#allocation3]  }
 0x2bd   :  { %1009 = dma.done.wait [#allocation3], 128  }
 0x2be   :  { %1010 = vsyncadd [#allocation3], 4294967168 }
 0x2bf   :  { %770 = vsyncpa [#allocation3], 1 }

</bundles_post_ra>
